<compile_context>
chip_gen: v5e
topology: v5e:2x2
jax: 0.10.0
libtpu: 0.0.40
codegen_flags: <defaults>
</compile_context>

<pallas_src>
import jax
import jax.numpy as jnp
from jax.experimental import pallas as pl
from jax.experimental.pallas import tpu as pltpu

PADDING = 28

_LANE = 128
_SUBLANE = 8
# Per-step input+output tile budget; double-buffered (2x4 MiB) this fits v5e's
# 16 MiB default scoped VMEM and v7x's 32 MiB scoped / 64 MiB physical VMEM.
_TARGET_TILE_BYTES = 4 * 1024 * 1024
# VMEM budget for the resident block-diagonal ones matrix of the small-x path.
_MAX_REDUCE_MAT_VMEM = 1 * 1024 * 1024


def _round_up(v: int, m: int) -> int:
    return ((v + m - 1) // m) * m


def _sum_rows_kernel(img_ref, out_ref):
    # img_ref: (bn, y, x) tile; out_ref: (1, bn, y).
    # torch.sum(image, dim=1) on a 2-D (y, x) image sums over x (the last axis).
    img = img_ref[...].astype(jnp.float32)
    out_ref[0] = jnp.sum(img, axis=-1)


def _sum_rows_flat_kernel(img_ref, red_ref, out_ref):
    # img_ref: (bn, y*x) lane-dense rows; red_ref: (y*x, y) block-diagonal ones
    # (resident in VMEM); out_ref: (1, bn, y).  Segmented x-reduction on the MXU.
    img = img_ref[...].astype(jnp.float32)
    out_ref[0] = jnp.dot(
        img, red_ref[...],
        preferred_element_type=jnp.float32,
        precision=jax.lax.Precision.HIGHEST,   # keep f32 accuracy of the torch sum
    )


def _choose_rows_per_block(num_rows: int, row_vmem_bytes: int) -> int:
    bn = max(1, _TARGET_TILE_BYTES // max(row_vmem_bytes, 1))
    bn = min(bn, num_rows)
    if bn >= _SUBLANE:
        bn -= bn % _SUBLANE   # sublane friendly; also keeps the flat-path input
                              # block's second-to-last dim a multiple of 8
    return bn


def img_to_sinogram(image_batch: jax.Array) -> jax.Array:
    assert image_batch.ndim == 4, "Invalid image_batch shape. Expected (n, k, y, x)."
    n, k, y, x = image_batch.shape
    # The module writes a length-y line integral into a width-(x + 2*28) row,
    # which only type-checks for square images.
    assert y == x, "ImgToSinogram semantics require square images (y == x)."

    rows = n * k
    itemsize = image_batch.dtype.itemsize
    out_row_vmem = _round_up(y, _LANE) * 4

    # Lane-dense small-x path: flattened (rows, y*x) DMA + MXU segmented reduce.
    red_mat_vmem = _round_up(y * x, _SUBLANE) * _round_up(y, _LANE) * 4
    use_flat = (x % _LANE != 0) and (red_mat_vmem <= _MAX_REDUCE_MAT_VMEM)

    if use_flat:
        in_row_vmem = _round_up(y * x, _LANE) * itemsize
    else:
        in_row_vmem = _round_up(y, _SUBLANE) * _round_up(x, _LANE) * itemsize

    bn = _choose_rows_per_block(rows, in_row_vmem + out_row_vmem)
    num_blocks = pl.cdiv(rows, bn)

    est_vmem = 2 * bn * (in_row_vmem + out_row_vmem) + (2 * red_mat_vmem if use_flat else 0)
    vmem_limit = None
    if est_vmem > 12 * 1024 * 1024:   # only hit for huge single-image rows (bn small)
        vmem_limit = min(_round_up(est_vmem, 1 << 20) + (8 << 20), 64 << 20)

    compiler_params = pltpu.CompilerParams(
        dimension_semantics=("parallel",),
        vmem_limit_bytes=vmem_limit,
    )
    cost = pl.CostEstimate(
        flops=rows * y * x,   # one add per input element
        transcendentals=0,
        bytes_accessed=rows * y * x * itemsize + rows * y * 4,
    )

    # Output (num_blocks, bn, y): block last-two dims == array dims for any bn.
    out_shape = jax.ShapeDtypeStruct((num_blocks, bn, y), jnp.float32)
    out_spec = pl.BlockSpec((1, bn, y), lambda i: (i, 0, 0))

    if use_flat:
        img_rows = image_batch.reshape(rows, y * x)   # free view reshape
        # red_mat[a, b] = 1 iff a // x == b, so (img_rows @ red_mat)[r, b] = sum_x image[r, b, :]
        red_mat = jnp.repeat(jnp.eye(y, dtype=jnp.float32), x, axis=0)
        line = pl.pallas_call(
            _sum_rows_flat_kernel,
            out_shape=out_shape,
            grid=(num_blocks,),
            in_specs=[
                pl.BlockSpec((bn, y * x), lambda i: (i, 0)),
                pl.BlockSpec((y * x, y), lambda i: (0, 0)),   # constant block index -> stays resident
            ],
            out_specs=out_spec,
            compiler_params=compiler_params,
            cost_estimate=cost,
        )(img_rows, red_mat)
    else:
        img_rows = image_batch.reshape(rows, y, x)    # free view reshape
        line = pl.pallas_call(
            _sum_rows_kernel,
            out_shape=out_shape,
            grid=(num_blocks,),
            in_specs=[pl.BlockSpec((bn, y, x), lambda i: (i, 0, 0))],
            out_specs=out_spec,
            compiler_params=compiler_params,
            cost_estimate=cost,
        )(img_rows)

    line = line.reshape(num_blocks * bn, y)[:rows].reshape(n, k, y)
    # 28-lane zero pad outside the kernel: ~1/x of the input bytes, essentially
    # free against the HBM read that dominates this kernel.
    return jnp.pad(line, ((0, 0), (0, 0), (PADDING, PADDING)))


def _reference(image_batch: jax.Array) -> jax.Array:
    line = jnp.sum(image_batch.astype(jnp.float32), axis=-1)   # (n, k, y)
    return jnp.pad(line, ((0, 0), (0, 0), (PADDING, PADDING)))


if __name__ == "__main__":
    key0, key1 = jax.random.split(jax.random.PRNGKey(0))
    fn = jax.jit(img_to_sinogram)

    # Small-x lane-dense (MXU) path.
    n, k, y, x = 2, 4, 16, 16
    image_batch = jax.random.normal(key0, (n, k, y, x), dtype=jnp.float32)
    out = jax.block_until_ready(fn(image_batch))
    ref = _reference(image_batch)
    assert out.shape == (n, k, x + 2 * PADDING), out.shape
    assert out.dtype == jnp.float32
    assert jnp.allclose(out, ref, atol=1e-4, rtol=1e-5), "flat path mismatch vs reference"

    # Lane-aligned (x % 128 == 0) general path.
    n2, k2, y2, x2 = 2, 2, 128, 128
    image_batch2 = jax.random.normal(key1, (n2, k2, y2, x2), dtype=jnp.float32)
    out2 = jax.block_until_ready(fn(image_batch2))
    ref2 = _reference(image_batch2)
    assert out2.shape == (n2, k2, x2 + 2 * PADDING), out2.shape
    assert jnp.allclose(out2, ref2, atol=1e-4, rtol=1e-4), "rows path mismatch vs reference"

    print("KERNEL_OK")
</pallas_src>

<mosaic_0001>
module attributes {stable_mosaic.version = 11 : i64} {
  func.func @_sum_rows_flat_kernel(%arg0: i32, %arg1: memref<8x256xf32, #tpu.memory_space<vmem>>, %arg2: memref<256x16xf32, #tpu.memory_space<vmem>>, %arg3: memref<1x8x16xf32, #tpu.memory_space<vmem>>) attributes {dimension_semantics = [#tpu.dimension_semantics<parallel>], iteration_bounds = array<i64: 1>, scalar_prefetch = 0 : i64, scratch_operands = 0 : i64, tpu.core_type = #tpu.core_type<tc>, window_params = [{transform_indices = @transform_0, window_bounds = array<i64: 8, 256>}, {pipeline_mode = #tpu.pipeline_mode<synchronous>, transform_indices = @transform_1, window_bounds = array<i64: 256, 16>}, {transform_indices = @transform_2, window_bounds = array<i64: 1, 8, 16>}]} {
    %c0 = arith.constant 0 : index
    %c0_0 = arith.constant 0 : index
    %0 = vector.load %arg1[%c0, %c0_0] : memref<8x256xf32, #tpu.memory_space<vmem>>, vector<8x256xf32>
    %c0_1 = arith.constant 0 : index
    %c0_2 = arith.constant 0 : index
    %1 = vector.load %arg2[%c0_1, %c0_2] : memref<256x16xf32, #tpu.memory_space<vmem>>, vector<256x16xf32>
    %cst = arith.constant dense<0.000000e+00> : vector<8x16xf32>
    %2 = tpu.matmul %0, %1, %cst {dimension_numbers = #tpu.dot_dimension_numbers<[1], [0], [0], [1], [0, 0, 1, 1], [], []>, precision = #tpu.contract_precision<fp32>} : vector<8x256xf32>, vector<256x16xf32>, vector<8x16xf32> -> vector<8x16xf32>
    %c0_3 = arith.constant 0 : index
    %c0_4 = arith.constant 0 : index
    %c0_5 = arith.constant 0 : index
    %3 = vector.load %arg3[%c0_3, %c0_4, %c0_5] : memref<1x8x16xf32, #tpu.memory_space<vmem>>, vector<1x8x16xf32>
    %4 = vector.shape_cast %3 : vector<1x8x16xf32> to vector<8x16xf32>
    %5 = vector.shape_cast %2 : vector<8x16xf32> to vector<1x8x16xf32>
    tpu.vector_store %arg3[%c0_3, %c0_4, %c0_5], %5 {strides = array<i32>} : memref<1x8x16xf32, #tpu.memory_space<vmem>>, vector<1x8x16xf32>,
    return
  }
  func.func @transform_0(%arg0: i32) -> (i32, i32) {
    %c0_i32 = arith.constant 0 : i32
    %c0_i32_0 = arith.constant 0 : i32
    return %arg0, %c0_i32 : i32, i32
  }
  func.func @transform_1(%arg0: i32) -> (i32, i32) {
    %c0_i32 = arith.constant 0 : i32
    %c0_i32_0 = arith.constant 0 : i32
    %c0_i32_1 = arith.constant 0 : i32
    return %c0_i32, %c0_i32_0 : i32, i32
  }
  func.func @transform_2(%arg0: i32) -> (i32, i32, i32) {
    %c0_i32 = arith.constant 0 : i32
    %c0_i32_0 = arith.constant 0 : i32
    %c0_i32_1 = arith.constant 0 : i32
    return %arg0, %c0_i32, %c0_i32_0 : i32, i32, i32
  }
}

</mosaic_0001>

<bundles_post_ra>
// kernel: img_to_sinogram.1
= control target key start
LH: loop header
LB: loop body
LE: loop exit
PB: predicated region body
PF: predicated region fallthrough
CT: control target
= control target key end

     0   :  { %vm727_vm0 = vcmask 130048   ;;  %s1359_s1 = inlined_call_operand.vmem [shape: f32[256,16], index: 1, kind: input, shape index: {}]   ;;  %s1360_s0 = inlined_call_operand.vmem [shape: f32[8,256], index: 0, kind: input, shape index: {}]   ;;  %s1361_s2 = inlined_call_operand.vmem [shape: f32[1,8,16], index: 2, kind: output, shape index: {}]  }
   0x1   :  { %v28_v0 = vld [vmem:[%s1359_s1 + $0x78] sm:$0xff]  ;;  %v27_v1 = vld [vmem:[%s1359_s1 + $0x70] sm:$0xff]  ;;  %v26_v2 = vld [vmem:[%s1359_s1 + $0x68] sm:$0xff] }
   0x2   :  { %v757_v3 = vand.u32 4294901760, %v28_v0  ;;  %v759_v4 = vand.u32 4294901760, %v27_v1  ;;  %v761_v5 = vand.u32 4294901760, %v26_v2  ;;  %v25_v6 = vld [vmem:[%s1359_s1 + $0x60] sm:$0xff]  ;;  %v24_v7 = vld [vmem:[%s1359_s1 + $0x58] sm:$0xff]  ;;  %v23_v8 = vld [vmem:[%s1359_s1 + $0x50] sm:$0xff] }
   0x3   :  { %v772_v9 = vand.u32 4294901760, %v25_v6  ;;  %v774_v10 = vand.u32 4294901760, %v24_v7  ;;  %v776_v11 = vand.u32 4294901760, %v23_v8  ;;  %v22_v12 = vld [vmem:[%s1359_s1 + $0x48] sm:$0xff]  ;;  %v21_v13 = vld [vmem:[%s1359_s1 + $0x40] sm:$0xff]  ;;  %v20_v18 = vld [vmem:[%s1359_s1 + $0x38] sm:$0xff] }
   0x4   :  { %46 = vmatpush.msra.mxu0 %v757_v3  ;;  %v786_v14 = vsub.f32 %v28_v0, %v757_v3  ;;  %v789_v15 = vsub.f32 %v27_v1, %v759_v4  ;;  %242 = vmatpush.msra.mxu3 %v757_v3  ;;  %v793_v16 = vsub.f32 %v26_v2, %v761_v5  ;;  %v795_v17 = vand.u32 4294901760, %v22_v12  ;;  %v19_v26 = vld [vmem:[%s1359_s1 + $0x30] sm:$0xff]  ;;  %v18_v34 = vld [vmem:[%s1359_s1 + $0x28] sm:$0xff]  ;;  %v17_v42 = vld [vmem:[%s1359_s1 + $0x20] sm:$0xff] }
   0x5   :  { %v801_v19 = vsub.f32 %v25_v6, %v772_v9  ;;  %v804_v20 = vsub.f32 %v24_v7, %v774_v10  ;;  %v807_v21 = vsub.f32 %v23_v8, %v776_v11  ;;  %v814_v25 = vand.u32 4294901760, %v21_v13  ;;  %v16_v48 = vld [vmem:[%s1359_s1 + $0x18] sm:$0xff]  ;;  %v15_v54 = vld [vmem:[%s1359_s1 + $0x10] sm:$0xff]  ;;  %v14_v61 = vld [vmem:[%s1359_s1 + $0x8] sm:$0xff] }
   0x6   :  { %48 = vmatpush.msra.mxu0 %v759_v4  ;;  %189 = vmatpush.msra.mxu2 %v786_v14  ;;  %v88_v22 = vand.u32 4294901760, %v786_v14  ;;  %v1377_v23 = vand.u32 4294901760, %v789_v15  ;;  %v1375_v24 = vand.u32 4294901760, %v793_v16  ;;  %v821_v28 = vand.u32 4294901760, %v20_v18  ;;  %v44_v59 = vld [vmem:[%s1359_s1 + $0xf8] sm:$0xff]  ;;  %v13_v2 = vld [vmem:[%s1359_s1] sm:$0xff] }
   0x7   :  { %244 = vmatpush.msra.mxu3 %v759_v4  ;;  %v1373_v27 = vand.u32 4294901760, %v801_v19  ;;  %v824_v29 = vsub.f32 %v22_v12, %v795_v17  ;;  %v1371_v33 = vand.u32 4294901760, %v804_v20  ;;  %v842_v35 = vand.u32 4294901760, %v19_v26  ;;  %v43_v6 = vld [vmem:[%s1359_s1 + $0xf0] sm:$0xff] }
   0x8   :  { %50 = vmatpush.msra.mxu0 %v761_v5  ;;  %192 = vmatpush.msra.mxu2 %v789_v15  ;;  %v89_v30 = vsub.f32 %v786_v14, %v88_v22  ;;  %v95_v31 = vsub.f32 %v789_v15, %v1377_v23  ;;  %v101_v32 = vsub.f32 %v793_v16, %v1375_v24  ;;  %v1370_v36 = vand.u32 4294901760, %v807_v21 }
   0x9   :  { %246 = vmatpush.msra.mxu3 %v761_v5  ;;  %v107_v39 = vsub.f32 %v801_v19, %v1373_v27  ;;  %v851_v40 = vsub.f32 %v21_v13, %v814_v25  ;;  %v854_v41 = vand.u32 4294901760, %v18_v34  ;;  %v113_v44 = vsub.f32 %v804_v20, %v1371_v33 }
   0xa   :  { %52 = vmatpush.msra.mxu0 %v772_v9  ;;  %v90_v37 = vand.u32 4294901760, %v89_v30  ;;  %195 = vmatpush.msra.mxu2 %v793_v16  ;;  %v96_v38 = vand.u32 4294901760, %v95_v31  ;;  %v102_v43 = vand.u32 4294901760, %v101_v32  ;;  %v1368_v45 = vand.u32 4294901760, %v824_v29  ;;  %v42_v32 = vld [vmem:[%s1359_s1 + $0xe8] sm:$0xff] }
   0xb   :  { %248 = vmatpush.msra.mxu3 %v772_v9  ;;  %v865_v46 = vsub.f32 %v20_v18, %v821_v28  ;;  %v119_v47 = vsub.f32 %v807_v21, %v1370_v36  ;;  %v108_v49 = vand.u32 4294901760, %v107_v39  ;;  %v876_v50 = vand.u32 4294901760, %v17_v42 }
   0xc   :  { %54 = vmatpush.msra.mxu0 %v774_v10  ;;  %91 = vmatpush.msra.mxu1 %v90_v37  ;;  %v1367_v51 = vand.u32 4294901760, %v851_v40  ;;  %v880_v52 = vsub.f32 %v19_v26, %v842_v35  ;;  %v885_v53 = vsub.f32 %v18_v34, %v854_v41  ;;  %v114_v55 = vand.u32 4294901760, %v113_v44  ;;  %v41_v44 = vld [vmem:[%s1359_s1 + $0xe0] sm:$0xff] }
   0xd   :  { %198 = vmatpush.msra.mxu2 %v801_v19  ;;  %250 = vmatpush.msra.mxu3 %v774_v10  ;;  %v125_v56 = vsub.f32 %v824_v29, %v1368_v45  ;;  %v894_v57 = vand.u32 4294901760, %v16_v48  ;;  %v1366_v58 = vand.u32 4294901760, %v865_v46  ;;  %v120_v60 = vand.u32 4294901760, %v119_v47  ;;  %v37_v45 = vld [vmem:[%s1359_s1 + $0xc0] sm:$0xff] }
   0xe   :  { %56 = vmatpush.msra.mxu0 %v776_v11  ;;  %97 = vmatpush.msra.mxu1 %v96_v38  ;;  %v131_v62 = vsub.f32 %v851_v40, %v1367_v51  ;;  %v909_v63 = vand.u32 4294901760, %v15_v54  ;;  %v1364_v0 = vand.u32 4294901760, %v880_v52  ;;  %v913_v1 = vsub.f32 %v17_v42, %v876_v50 }
   0xf   :  { %201 = vmatpush.msra.mxu2 %v804_v20  ;;  %252 = vmatpush.msra.mxu3 %v776_v11  ;;  %v1363_v7 = vand.u32 4294901760, %v885_v53  ;;  %v924_v8 = vand.u32 4294901760, %v44_v59  ;;  %v126_v12 = vand.u32 4294901760, %v125_v56  ;;  %v137_v13 = vsub.f32 %v865_v46, %v1366_v58 }
  0x10   :  { %58 = vmatpush.msra.mxu0 %v795_v17  ;;  %103 = vmatpush.msra.mxu1 %v102_v43  ;;  %v930_v18 = vand.u32 4294901760, %v14_v61  ;;  %v933_v26 = vsub.f32 %v16_v48, %v894_v57  ;;  %v937_v30 = vand.u32 4294901760, %v13_v2  ;;  %v939_v31 = vand.u32 4294901760, %v43_v6 }
  0x11   :  { %204 = vmatpush.msra.mxu2 %v807_v21  ;;  %254 = vmatpush.msra.mxu3 %v795_v17  ;;  %v132_v34 = vand.u32 4294901760, %v131_v62  ;;  %v143_v37 = vsub.f32 %v880_v52, %v1364_v0  ;;  %v1362_v38 = vand.u32 4294901760, %v913_v1  ;;  %v950_v39 = vsub.f32 %v15_v54, %v909_v63 }
  0x12   :  { %60 = vmatpush.msra.mxu0 %v814_v25  ;;  %109 = vmatpush.msra.mxu1 %v108_v49  ;;  %v149_v42 = vsub.f32 %v885_v53, %v1363_v7  ;;  %v958_v43 = vsub.f32 %v44_v59, %v924_v8  ;;  %v138_v47 = vand.u32 4294901760, %v137_v13  ;;  %v1365_v48 = vand.u32 4294901760, %v933_v26  ;;  %v40_v59 = vld [vmem:[%s1359_s1 + $0xd8] sm:$0xff]  ;;  %v39_v13 = vld [vmem:[%s1359_s1 + $0xd0] sm:$0xff]  ;;  %v38_v7 = vld [vmem:[%s1359_s1 + $0xc8] sm:$0xff] }
  0x13   :  { %207 = vmatpush.msra.mxu2 %v824_v29  ;;  %256 = vmatpush.msra.mxu3 %v814_v25  ;;  %v966_v49 = vsub.f32 %v14_v61, %v930_v18  ;;  %v968_v54 = vand.u32 4294901760, %v42_v32  ;;  %v976_v56 = vsub.f32 %v43_v6, %v939_v31  ;;  %v155_v61 = vsub.f32 %v913_v1, %v1362_v38 }
  0x14   :  { %62 = vmatpush.msra.mxu0 %v821_v28  ;;  %115 = vmatpush.msra.mxu1 %v114_v55  ;;  %v973_v55 = vsub.f32 %v13_v2, %v937_v30  ;;  %v1369_v62 = vand.u32 4294901760, %v950_v39  ;;  %v150_v2 = vand.u32 4294901760, %v149_v42  ;;  %v1372_v6 = vand.u32 4294901760, %v958_v43 }
  0x15   :  { %210 = vmatpush.msra.mxu2 %v851_v40  ;;  %258 = vmatpush.msra.mxu3 %v821_v28  ;;  %v1000_v38 = vsub.f32 %v42_v32, %v968_v54  ;;  %v1002_v42 = vand.u32 4294901760, %v40_v59  ;;  %v1376_v0 = vand.u32 4294901760, %v976_v56  ;;  %v1018_v51 = vand.u32 4294901760, %v39_v13 }
  0x16   :  { %64 = vmatpush.msra.mxu0 %v842_v35  ;;  %121 = vmatpush.msra.mxu1 %v120_v60  ;;  %v144_v60 = vand.u32 4294901760, %v143_v37  ;;  %v1374_v37 = vand.u32 4294901760, %v966_v49  ;;  %v167_v32 = vsub.f32 %v950_v39, %v1369_v62  ;;  %v1043_v27 = vand.u32 4294901760, %v37_v45 }
  0x17   :  { %213 = vmatpush.msra.mxu2 %v865_v46  ;;  %260 = vmatpush.msra.mxu3 %v842_v35  ;;  %v1379_v36 = vand.u32 4294901760, %v1000_v38  ;;  %v1036_v33 = vsub.f32 %v40_v59, %v1002_v42  ;;  %v1054_v24 = vsub.f32 %v39_v13, %v1018_v51 }
  0x18   :  { %66 = vmatpush.msra.mxu0 %v854_v41  ;;  %127 = vmatpush.msra.mxu1 %v126_v12  ;;  %v986_v12 = vand.u32 4294901760, %v41_v44  ;;  %v173_v62 = vsub.f32 %v966_v49, %v1374_v37 }
  0x19   :  { %216 = vmatpush.msra.mxu2 %v880_v52  ;;  %262 = vmatpush.msra.mxu3 %v854_v41  ;;  %v442_v13 = vsub.f32 %v1000_v38, %v1379_v36  ;;  %v1381_v14 = vand.u32 4294901760, %v1036_v33 }
  0x1a   :  { %68 = vmatpush.msra.mxu0 %v876_v50  ;;  %133 = vmatpush.msra.mxu1 %v132_v34  ;;  %v161_v34 = vsub.f32 %v933_v26, %v1365_v48  ;;  %v156_v48 = vand.u32 4294901760, %v155_v61  ;;  %v1016_v58 = vsub.f32 %v41_v44, %v986_v12  ;;  %v1028_v61 = vand.u32 4294901760, %v38_v7 }
  0x1b   :  { %219 = vmatpush.msra.mxu2 %v885_v53  ;;  %264 = vmatpush.msra.mxu3 %v876_v50 }
  0x1c   :  { %70 = vmatpush.msra.mxu0 %v894_v57  ;;  %139 = vmatpush.msra.mxu1 %v138_v47  ;;  %v1378_v47 = vand.u32 4294901760, %v973_v55  ;;  %v162_v44 = vand.u32 4294901760, %v161_v34  ;;  %v168_v34 = vand.u32 4294901760, %v167_v32  ;;  %v1380_v37 = vand.u32 4294901760, %v1016_v58 }
  0x1d   :  { %222 = vmatpush.msra.mxu2 %v913_v1  ;;  %266 = vmatpush.msra.mxu3 %v894_v57  ;;  %v1060_v23 = vsub.f32 %v38_v7, %v1028_v61  ;;  %v174_v32 = vand.u32 4294901760, %v173_v62  ;;  %v34_v62 = vld [vmem:[%s1359_s1 + $0xa8] sm:$0xff] }
  0x1e   :  { %72 = vmatpush.msra.mxu0 %v909_v63  ;;  %145 = vmatpush.msra.mxu1 %v144_v60  ;;  %v430_v60 = vsub.f32 %v958_v43, %v1372_v6  ;;  %v436_v6 = vsub.f32 %v976_v56, %v1376_v0  ;;  %v179_v59 = vsub.f32 %v973_v55, %v1378_v47 }
  0x1f   :  { %225 = vmatpush.msra.mxu2 %v933_v26  ;;  %268 = vmatpush.msra.mxu3 %v909_v63  ;;  %v1076_v47 = vsub.f32 %v37_v45, %v1043_v27  ;;  %v448_v36 = vsub.f32 %v1016_v58, %v1380_v37  ;;  %v454_v37 = vsub.f32 %v1036_v33, %v1381_v14  ;;  %v1385_v14 = vand.u32 4294901760, %v1054_v24 }
  0x20   :  { %74 = vmatpush.msra.mxu0 %v930_v18  ;;  %151 = vmatpush.msra.mxu1 %v150_v2  ;;  %v36_v2 = vld [vmem:[%s1359_s1 + $0xb8] sm:$0xff]  ;;  %v431_v0 = vand.u32 4294901760, %v430_v60  ;;  %v1382_v60 = vand.u32 4294901760, %v789_v15  ;;  %v437_v7 = vand.u32 4294901760, %v436_v6  ;;  %v1383_v6 = vand.u32 4294901760, %v793_v16 }
  0x21   :  { %228 = vmatpush.msra.mxu2 %v950_v39  ;;  %270 = vmatpush.msra.mxu3 %v930_v18  ;;  %v1101_v16 = vand.u32 4294901760, %v34_v62 }
  0x22   :  { %76 = vmatpush.msra.mxu0 %v937_v30  ;;  %157 = vmatpush.msra.mxu1 %v156_v48  ;;  %v35_v48 = vld [vmem:[%s1359_s1 + $0xb0] sm:$0xff] }
  0x23   :  { %231 = vmatpush.msra.mxu2 %v966_v49  ;;  %272 = vmatpush.msra.mxu3 %v937_v30 }
  0x24   :  { %283 = vmatpush.msrb.mxu0 %v88_v22  ;;  %163 = vmatpush.msra.mxu1 %v162_v44  ;;  %v1070_v22 = vand.u32 4294901760, %v36_v2  ;;  %v180_v44 = vand.u32 4294901760, %v179_v59  ;;  %v443_v59 = vand.u32 4294901760, %v442_v13  ;;  %v449_v13 = vand.u32 4294901760, %v448_v36  ;;  %v11_v36 = vld [vmem:[%s1360_s0] sm:$0xff] }
  0x25   :  { %234 = vmatpush.msra.mxu2 %v973_v55  ;;  %432 = vmatpush.msrb.mxu3 %v431_v0  ;;  %v1384_v0 = vand.u32 4294901760, %v801_v19 }
  0x26   :  { %287 = vmatpush.msrb.mxu0 %v1382_v60  ;;  %169 = vmatpush.msra.mxu1 %v168_v34  ;;  %v1086_v60 = vand.u32 4294901760, %v35_v48  ;;  %v33_v34 = vld [vmem:[%s1359_s1 + $0xa0] sm:$0xff]  ;;  %v1099_v15 = vsub.f32 %v36_v2, %v1070_v22  ;;  %v460_v2 = vsub.f32 %v1054_v24, %v1385_v14 }
  0x27   :  { %387 = vmatpush.msrb.mxu2 %v924_v8  ;;  %438 = vmatpush.msrb.mxu3 %v437_v7  ;;  %v1116_v19 = vand.u32 4294901760, %v33_v34  ;;  %v1386_v7 = vand.u32 4294901760, %v804_v20 }
  0x28   :  { %291 = vmatpush.msrb.mxu0 %v1383_v6  ;;  %175 = vmatpush.msra.mxu1 %v174_v32  ;;  %v32_v32 = vld [vmem:[%s1359_s1 + $0x98] sm:$0xff]  ;;  %v1114_v45 = vsub.f32 %v35_v48, %v1086_v60  ;;  %v455_v48 = vand.u32 4294901760, %v454_v37  ;;  %v1130_v6 = vsub.f32 %v34_v62, %v1101_v16  ;;  %v31_v37 = vld [vmem:[%s1359_s1 + $0x90] sm:$0xff]  ;;  %v461_v62 = vand.u32 4294901760, %v460_v2 }
  0x29   :  { %389 = vmatpush.msrb.mxu2 %v939_v31  ;;  %444 = vmatpush.msrb.mxu3 %v443_v59  ;;  %v1132_v20 = vand.u32 4294901760, %v32_v32  ;;  %v1146_v14 = vsub.f32 %v33_v34, %v1116_v19  ;;  %v1161_v59 = vand.u32 4294901760, %v31_v37 }
  0x2a   :  { %295 = vmatpush.msrb.mxu0 %v1384_v0  ;;  %181 = vmatpush.msra.mxu1 %v180_v44  ;;  %v1387_v0 = vand.u32 4294901760, %v1060_v23 }
  0x2b   :  { %391 = vmatpush.msrb.mxu2 %v968_v54  ;;  %450 = vmatpush.msrb.mxu3 %v449_v13  ;;  %v1391_v13 = vand.u32 4294901760, %v1099_v15 }
  0x2c   :  { %299 = vmatpush.msrb.mxu0 %v1386_v7  ;;  %350 = vmatpush.msrb.mxu1 %v757_v3  ;;  %v466_v44 = vsub.f32 %v1060_v23, %v1387_v0  ;;  %v1388_v3 = vand.u32 4294901760, %v807_v21  ;;  %v1389_v7 = vand.u32 4294901760, %v1076_v47  ;;  %v1148_v21 = vand.u32 4294901760, %v11_v36 }
  0x2d   :  { %393 = vmatpush.msrb.mxu2 %v986_v12  ;;  %456 = vmatpush.msrb.mxu3 %v455_v48  ;;  %v478_v34 = vsub.f32 %v1099_v15, %v1391_v13  ;;  %v1393_v48 = vand.u32 4294901760, %v1114_v45  ;;  %v1396_v13 = vand.u32 4294901760, %v880_v52  ;;  %v1398_v52 = vand.u32 4294901760, %v885_v53 }
  0x2e   :  { %303 = vmatpush.msrb.mxu0 %v1388_v3  ;;  %352 = vmatpush.msrb.mxu1 %v759_v4  ;;  %v472_v0 = vsub.f32 %v1076_v47, %v1389_v7  ;;  %v1390_v4 = vand.u32 4294901760, %v824_v29  ;;  %v467_v3 = vand.u32 4294901760, %v466_v44  ;;  %v30_v7 = vld [vmem:[%s1359_s1 + $0x88] sm:$0xff]  ;;  %v1164_v29 = vsub.f32 %v32_v32, %v1132_v20 }
  0x2f   :  { %395 = vmatpush.msrb.mxu2 %v1002_v42  ;;  %462 = vmatpush.msrb.mxu3 %v461_v62  ;;  %v1175_v2 = vsub.f32 %v11_v36, %v1148_v21  ;;  %v1177_v32 = vand.u32 4294901760, %v30_v7  ;;  %v1395_v62 = vand.u32 4294901760, %v1130_v6 }
  0x30   :  { %307 = vmatpush.msrb.mxu0 %v1390_v4  ;;  %354 = vmatpush.msrb.mxu1 %v761_v5  ;;  %v1392_v5 = vand.u32 4294901760, %v851_v40  ;;  %v473_v44 = vand.u32 4294901760, %v472_v0  ;;  %v484_v4 = vsub.f32 %v1114_v45, %v1393_v48  ;;  %v29_v40 = vld [vmem:[%s1359_s1 + $0x80] sm:$0xff]  ;;  %v479_v0 = vand.u32 4294901760, %v478_v34 }
  0x31   :  { %397 = vmatpush.msrb.mxu2 %v1018_v51  ;;  %468 = vmatpush.msrb.mxu3 %v467_v3  ;;  %v490_v36 = vsub.f32 %v1130_v6, %v1395_v62  ;;  %v1191_v48 = vsub.f32 %v31_v37, %v1161_v59  ;;  %v1397_v3 = vand.u32 4294901760, %v1146_v14  ;;  %v1204_v37 = vsub.f32 %v30_v7, %v1177_v32 }
  0x32   :  { %311 = vmatpush.msrb.mxu0 %v1392_v5  ;;  %356 = vmatpush.msrb.mxu1 %v772_v9  ;;  %v1394_v9 = vand.u32 4294901760, %v865_v46  ;;  %v501_v5 = vand.u32 4294901760, %v1164_v29  ;;  %v1196_v46 = vand.u32 4294901760, %v29_v40 }
  0x33   :  { %399 = vmatpush.msrb.mxu2 %v1028_v61  ;;  %474 = vmatpush.msrb.mxu3 %v473_v44  ;;  %v496_v34 = vsub.f32 %v1146_v14, %v1397_v3  ;;  %v491_v44 = vand.u32 4294901760, %v490_v36  ;;  %v507_v7 = vand.u32 4294901760, %v1191_v48  ;;  %v513_v36 = vand.u32 4294901760, %v1204_v37 }
  0x34   :  { %315 = vmatpush.msrb.mxu0 %v1394_v9  ;;  %358 = vmatpush.msrb.mxu1 %v774_v10  ;;  %v485_v10 = vand.u32 4294901760, %v484_v4  ;;  %v79_v9 = vand.u32 4294901760, %v1175_v2  ;;  %v502_v4 = vsub.f32 %v1164_v29, %v501_v5  ;;  %v1400_v3 = vand.u32 4294901760, %v933_v26 }
  0x35   :  { %401 = vmatpush.msrb.mxu2 %v1043_v27  ;;  %480 = vmatpush.msrb.mxu3 %v479_v0  ;;  %v497_v53 = vand.u32 4294901760, %v496_v34 }
  0x36   :  { %319 = vmatpush.msrb.mxu0 %v1396_v13  ;;  %360 = vmatpush.msrb.mxu1 %v776_v11  ;;  %v12_v11 = vld [vmem:[%s1360_s0 + $0x8] sm:$0xff]  ;;  %v1399_v13 = vand.u32 4294901760, %v913_v1  ;;  %v80_v0 = vsub.f32 %v1175_v2, %v79_v9  ;;  %v508_v1 = vsub.f32 %v1191_v48, %v507_v7 }
  0x37   :  { %403 = vmatpush.msrb.mxu2 %v1070_v22  ;;  %486 = vmatpush.msrb.mxu3 %v485_v10  ;;  %v1225_v62 = vand.u32 4294901760, %v12_v11 }
  0x38   :  { %323 = vmatpush.msrb.mxu0 %v1398_v52  ;;  %362 = vmatpush.msrb.mxu1 %v795_v17  ;;  %v1221_v17 = vsub.f32 %v29_v40, %v1196_v46  ;;  %v1401_v40 = vand.u32 4294901760, %v950_v39  ;;  %v81_v26 = vand.u32 4294901760, %v80_v0  ;;  %v1402_v52 = vand.u32 4294901760, %v966_v49 }
  0x39   :  { %405 = vmatpush.msrb.mxu2 %v1086_v60  ;;  %492 = vmatpush.msrb.mxu3 %v491_v44  ;;  %v1244_v34 = vsub.f32 %v12_v11, %v1225_v62  ;;  %v1403_v39 = vand.u32 4294901760, %v973_v55 }
  0x3a   :  { %327 = vmatpush.msrb.mxu0 %v1399_v13  ;;  %364 = vmatpush.msrb.mxu1 %v814_v25  ;;  %v503_v25 = vand.u32 4294901760, %v502_v4  ;;  %v519_v10 = vand.u32 4294901760, %v1221_v17 }
  0x3b   :  { %407 = vmatpush.msrb.mxu2 %v1101_v16  ;;  %498 = vmatpush.msrb.mxu3 %v497_v53  ;;  %v420_v11 = vand.u32 4294901760, %v1244_v34 }
  0x3c   :  { %331 = vmatpush.msrb.mxu0 %v1400_v3  ;;  %366 = vmatpush.msrb.mxu1 %v821_v28  ;;  %v514_v28 = vsub.f32 %v1204_v37, %v513_v36  ;;  %v520_v44 = vsub.f32 %v1221_v17, %v519_v10 }
  0x3d   :  { %409 = vmatpush.msrb.mxu2 %v1116_v19  ;;  %504 = vmatpush.msrb.mxu3 %v503_v25 }
  0x3e   :  { %335 = vmatpush.msrb.mxu0 %v1401_v40  ;;  %368 = vmatpush.msrb.mxu1 %v842_v35  ;;  %v509_v35 = vand.u32 4294901760, %v508_v1  ;;  %v515_v49 = vand.u32 4294901760, %v514_v28 }
  0x3f   :  { %411 = vmatpush.msrb.mxu2 %v1132_v20  ;;  %82 = vmatmul.f32.vlgmr.msra.gmra.mxu0 %v81_v26 }
  0x40   :  { %339 = vmatpush.msrb.mxu0 %v1402_v52  ;;  %370 = vmatpush.msrb.mxu1 %v854_v41  ;;  %v521_v41 = vand.u32 4294901760, %v520_v44 }
  0x41   :  { %413 = vmatpush.msrb.mxu2 %v1161_v59  ;;  %510 = vmatpush.msrb.mxu3 %v509_v35 }
  0x42   :  { %343 = vmatpush.msrb.mxu0 %v1403_v39  ;;  %372 = vmatpush.msrb.mxu1 %v876_v50  ;;  %v421_v50 = vsub.f32 %v1244_v34, %v420_v11 }
  0x43   :  { %415 = vmatpush.msrb.mxu2 %v1177_v32  ;;  %516 = vmatpush.msrb.mxu3 %v515_v49 }
  0x44   :  { %530 = vmatpush.msra.mxu0 %v958_v43  ;;  %374 = vmatpush.msrb.mxu1 %v894_v57  ;;  %v1404_v57 = vand.u32 4294901760, %v958_v43  ;;  %v422_v55 = vand.u32 4294901760, %v421_v50  ;;  %v1406_v43 = vand.u32 4294901760, %v1000_v38 }
  0x45   :  { %237 = vmatmul.f32.vlgmr.msra.gmra.mxu2 %v1175_v2  ;;  %276 = vmatmul.f32.vlgmr.msra.gmra.mxu3 %v79_v9 }
  0x46   :  { %533 = vmatpush.msra.mxu0 %v976_v56  ;;  %376 = vmatpush.msrb.mxu1 %v909_v63  ;;  %v1405_v63 = vand.u32 4294901760, %v976_v56 }
  0x47   :  { %417 = vmatpush.msrb.mxu2 %v1196_v46  ;;  %522 = vmatpush.msrb.mxu3 %v521_v41 }
  0x48   :  { %536 = vmatpush.msra.mxu0 %v1000_v38  ;;  %378 = vmatpush.msrb.mxu1 %v930_v18  ;;  %v1407_v18 = vand.u32 4294901760, %v1016_v58 }
  0x49   :  { %624 = vmatpush.msra.mxu2 %v1404_v57  ;;  %183 = vmatmul.f32.vlgmr.msra.gmra.mxu1 %v1148_v21 }
  0x4a   :  { %539 = vmatpush.msra.mxu0 %v1016_v58  ;;  %691 = vmatpush.msra.mxu3 %v924_v8  ;;  %v1409_v58 = vand.u32 4294901760, %v1054_v24 }
  0x4b   :  { %628 = vmatpush.msra.mxu2 %v1405_v63  ;;  %380 = vmatpush.msrb.mxu1 %v937_v30  ;;  %v1411_v30 = vand.u32 4294901760, %v1076_v47 }
  0x4c   :  { %542 = vmatpush.msra.mxu0 %v1036_v33  ;;  %693 = vmatpush.msra.mxu3 %v939_v31 }
  0x4d   :  { %583 = vmatpush.msra.mxu1 %v924_v8  ;;  %632 = vmatpush.msra.mxu2 %v1406_v43  ;;  %v1408_v8 = vand.u32 4294901760, %v1036_v33  ;;  %v1410_v33 = vand.u32 4294901760, %v1060_v23 }
  0x4e   :  { %423 = vmatmul.f32.vlgmr.msrb.gmra.mxu2 %v422_v55  ;;  %545 = vmatpush.msra.mxu0 %v1054_v24  ;;  %v1412_v24 = vand.u32 4294901760, %v1099_v15 }
  0x4f   :  { %585 = vmatpush.msra.mxu1 %v939_v31  ;;  %636 = vmatpush.msra.mxu2 %v1407_v18 }
  0x50   :  { %695 = vmatpush.msra.mxu3 %v968_v54  ;;  %345 = vmatmul.f32.vlgmr.msrb.gmra.mxu0 %v1148_v21 }
  0x51   :  { %524 = vmatmul.f32.vlgmr.msrb.gmra.mxu3 %v1225_v62  ;;  %548 = vmatpush.msra.mxu0 %v1060_v23  ;;  %v1413_v23 = vand.u32 4294901760, %v1114_v45 }
  0x52   :  { %587 = vmatpush.msra.mxu1 %v968_v54  ;;  %640 = vmatpush.msra.mxu2 %v1408_v8 }
  0x53   :  { %697 = vmatpush.msra.mxu3 %v986_v12  ;;  %382 = vmatmul.f32.vlgmr.msrb.gmra.mxu1 %v1148_v21 }
  0x54   :  { %551 = vmatpush.msra.mxu0 %v1076_v47  ;;  %589 = vmatpush.msra.mxu1 %v986_v12 }
  0x55   :  { %644 = vmatpush.msra.mxu2 %v1409_v58  ;;  %699 = vmatpush.msra.mxu3 %v1002_v42 }
  0x56   :  { %554 = vmatpush.msra.mxu0 %v1099_v15  ;;  %591 = vmatpush.msra.mxu1 %v1002_v42 }
  0x57   :  { %648 = vmatpush.msra.mxu2 %v1410_v33  ;;  %701 = vmatpush.msra.mxu3 %v1018_v51 }
  0x58   :  { %557 = vmatpush.msra.mxu0 %v1114_v45  ;;  %593 = vmatpush.msra.mxu1 %v1018_v51  ;;  %v1414_v51 = vand.u32 4294901760, %v1130_v6 }
  0x59   :  { %652 = vmatpush.msra.mxu2 %v1411_v30  ;;  %703 = vmatpush.msra.mxu3 %v1028_v61 }
  0x5a   :  { %560 = vmatpush.msra.mxu0 %v1130_v6  ;;  %595 = vmatpush.msra.mxu1 %v1028_v61 }
  0x5b   :  { %656 = vmatpush.msra.mxu2 %v1412_v24  ;;  %705 = vmatpush.msra.mxu3 %v1043_v27 }
  0x5c   :  { %563 = vmatpush.msra.mxu0 %v1146_v14  ;;  %597 = vmatpush.msra.mxu1 %v1043_v27  ;;  %v1415_v27 = vand.u32 4294901760, %v1146_v14 }
  0x5d   :  { %660 = vmatpush.msra.mxu2 %v1413_v23  ;;  %707 = vmatpush.msra.mxu3 %v1070_v22 }
  0x5e   :  { %566 = vmatpush.msra.mxu0 %v1164_v29  ;;  %599 = vmatpush.msra.mxu1 %v1070_v22 }
  0x5f   :  { %664 = vmatpush.msra.mxu2 %v1414_v51  ;;  %709 = vmatpush.msra.mxu3 %v1086_v60 }
  0x60   :  { %569 = vmatpush.msra.mxu0 %v1191_v48  ;;  %601 = vmatpush.msra.mxu1 %v1086_v60 }
  0x61   :  { %668 = vmatpush.msra.mxu2 %v1415_v27  ;;  %711 = vmatpush.msra.mxu3 %v1101_v16 }
  0x62   :  { %572 = vmatpush.msra.mxu0 %v1204_v37  ;;  %603 = vmatpush.msra.mxu1 %v1101_v16 }
  0x63   :  { %672 = vmatpush.msra.mxu2 %v501_v5  ;;  %713 = vmatpush.msra.mxu3 %v1116_v19 }
  0x64   :  { %575 = vmatpush.msra.mxu0 %v1221_v17  ;;  %605 = vmatpush.msra.mxu1 %v1116_v19 }
  0x65   :  { %676 = vmatpush.msra.mxu2 %v507_v7  ;;  %715 = vmatpush.msra.mxu3 %v1132_v20 }
  0x66   :  { %578 = vmatmul.f32.vlgmr.msra.gmra.mxu0 %v1244_v34  ;;  %607 = vmatpush.msra.mxu1 %v1132_v20 }
  0x67   :  { %680 = vmatpush.msra.mxu2 %v513_v36  ;;  %717 = vmatpush.msra.mxu3 %v1161_v59 }
  0x68   :  { %609 = vmatpush.msra.mxu1 %v1161_v59 }
  0x69   :  { %684 = vmatpush.msra.mxu2 %v519_v10  ;;  %719 = vmatpush.msra.mxu3 %v1177_v32 }
  0x6a   :  { %686 = vmatmul.f32.vlgmr.msra.gmra.mxu2 %v1225_v62  ;;  %611 = vmatpush.msra.mxu1 %v1177_v32 }
  0x6b   :  { %721 = vmatpush.msra.mxu3 %v1196_v46 }
  0x6c   :  { %723 = vmatmul.f32.vlgmr.msra.gmra.mxu3 %v1225_v62  ;;  %613 = vmatpush.msra.mxu1 %v1196_v46 }
  0x6d   :  { %617 = vmatmul.f32.vlgmr.msra.gmra.mxu1 %v420_v11 }
  0xbc   :  { %v83_v38 = vpop.f32.mrf.mxu0 }
  0xc6   :  { %v184_v31 = vpop.f32.mrf.mxu1 }
  0xc7   :  { %v185_v54 = vadd.f32 %v184_v31, %v83_v38 }
  0xc8   :  { %v238_v56 = vpop.f32.mrf.mxu2  ;;  %v277_v42 = vpop.f32.mrf.mxu3 }
  0xc9   :  { %v239_v12 = vadd.f32 %v238_v56, %v185_v54 }
  0xcb   :  { %v278_v47 = vadd.f32 %v277_v42, %v239_v12 }
  0xcd   :  { %v346_v61 = vpop.f32.mrf.mxu0 }
  0xce   :  { %v347_v22 = vadd.f32 %v346_v61, %v278_v47 }
  0xd0   :  { %v383_v15 = vpop.f32.mrf.mxu1 }
  0xd1   :  { %v384_v60 = vadd.f32 %v383_v15, %v347_v22  ;;  %v424_v45 = vpop.f32.mrf.mxu2 }
  0xd3   :  { %v425_v16 = vadd.f32 %v424_v45, %v384_v60 }
  0xd4   :  { %v525_v6 = vpop.f32.mrf.mxu3 }
  0xd5   :  { %v526_v14 = vadd.f32 %v525_v6, %v425_v16 }
  0xe3   :  { %v579_v19 = vpop.f32.mrf.mxu0 }
  0xe4   :  { %v580_v20 = vadd.f32 %v579_v19, %v526_v14 }
  0xea   :  { %v618_v59 = vpop.f32.mrf.mxu1 }
  0xeb   :  { %v619_v21 = vadd.f32 %v618_v59, %v580_v20 }
  0xed   :  { %v687_v2 = vpop.f32.mrf.mxu2 }
  0xee   :  { %v688_v29 = vadd.f32 %v687_v2, %v619_v21 }
  0xef   :  { %v724_v32 = vpop.f32.mrf.mxu3 }
  0xf0   :  { %v725_v5 = vadd.f32 %v724_v32, %v688_v29 }
  0xf2   :  { %728 = vst.msk [vmem:[%s1361_s2] sm:$0xff] %vm727_vm0, %v725_v5 }

</bundles_post_ra>
